<compile_context>
chip_gen: v7x
topology: tpu7x:2x2x1
jax: 0.10.0
libtpu: 0.0.40
codegen_flags: <defaults>
</compile_context>

<pallas_src>
import jax
import jax.numpy as jnp
from jax.experimental import pallas as pl
from jax.experimental.pallas import tpu as pltpu


LANES = 128
SUBLANES = 8
_VMEM_LIMIT_BYTES = 32 << 20   # explicit scoped-VMEM limit; safe on v5e/v6e/v7x


def _default_row_tile():
    """Generation-aware row tile: 4 MiB f32 block on v6e/v7x, 2 MiB on v5e."""
    try:
        kind = jax.devices()[0].device_kind.lower()
    except Exception:
        kind = ""
    if ("v5 lite" in kind) or ("v5e" in kind) or ("v5lite" in kind):
        return 4096
    return 8192


def _round_up(v, m):
    return ((v + m - 1) // m) * m


def _maxwell_kernel(coef_ref, x_ref, o_ref):
    # coef_ref: SMEM (4,) f32 -> [a, b, c, x0]
    a = coef_ref[0]
    nb = -coef_ref[1]            # hoist scalar negate out of the vector expression
    c = coef_ref[2]
    x0 = coef_ref[3]
    x = x_ref[...].astype(jnp.float32)        # compute in f32 regardless of input dtype
    y = a * (x * x) * jnp.exp(nb * jnp.abs(x - x0)) + c
    o_ref[...] = y.astype(o_ref.dtype)        # cast in-register; store in caller's dtype


def maxwell_forward(x, coefficients, row_tile=None):
    """Elementwise Maxwell fit: a * X**2 * exp(-b * |X - x0|) + c. x: any shape."""
    orig_shape = x.shape
    orig_dtype = x.dtype
    coef32 = coefficients.astype(jnp.float32)

    flat = x.reshape(-1)                      # free (contiguous bitcast)
    n = flat.shape[0]
    if n == 0:
        return x

    n_tail = n % LANES                        # <128 leftover handled by plain jnp
    n_main = n - n_tail

    parts = []
    if n_main:
        x2d = flat[:n_main].reshape(-1, LANES)     # (rows, 128) lane-dense slab
        rows = x2d.shape[0]

        tile = row_tile if row_tile is not None else _default_row_tile()
        # Ensure >= 2 grid steps when there is enough data (v7x: 2 TCs/chip).
        half_rows = _round_up(pl.cdiv(rows, 2), SUBLANES)
        tile = max(SUBLANES, min(tile, half_rows))

        itemsize = jnp.dtype(orig_dtype).itemsize
        out2d = pl.pallas_call(
            _maxwell_kernel,
            out_shape=jax.ShapeDtypeStruct((rows, LANES), orig_dtype),
            grid_spec=pltpu.PrefetchScalarGridSpec(
                num_scalar_prefetch=1,
                grid=(pl.cdiv(rows, tile),),       # ragged last block -> masked by Pallas
                in_specs=[pl.BlockSpec((tile, LANES), lambda i, coef: (i, 0))],
                out_specs=pl.BlockSpec((tile, LANES), lambda i, coef: (i, 0)),
            ),
            compiler_params=pltpu.CompilerParams(
                dimension_semantics=("parallel",),        # shards rows across TCs on v7x
                vmem_limit_bytes=_VMEM_LIMIT_BYTES,
            ),
            cost_estimate=pl.CostEstimate(
                flops=7 * n_main,
                transcendentals=n_main,
                bytes_accessed=2 * n_main * itemsize,
            ),
        )(coef32, x2d)
        parts.append(out2d.reshape(-1))

    if n_tail:
        # <128-element tail: cheaper as plain jnp than padding/slicing the whole array.
        t = flat[n_main:].astype(jnp.float32)
        a, b, c, x0 = coef32[0], coef32[1], coef32[2], coef32[3]
        ty = (a * t * t * jnp.exp(-b * jnp.abs(t - x0)) + c).astype(orig_dtype)
        parts.append(ty)

    out = parts[0] if len(parts) == 1 else jnp.concatenate(parts)
    return out.reshape(orig_shape)


def init_coefficients(key, a=None, b=None, c=None, x0=None):
    """Mimic __init__: Uniform(0, 0.1) sample of shape (4,), with optional overrides."""
    w = jax.random.uniform(key, (4,), minval=0.0, maxval=0.1, dtype=jnp.float32)
    for i, v in enumerate([a, b, c, x0]):
        if v is not None:
            w = w.at[i].set(jnp.float32(v))
    return w


def _reference(x, coef):
    xf = x.astype(jnp.float32)
    a, b, c, x0 = coef[0], coef[1], coef[2], coef[3]
    return (a * xf**2 * jnp.exp(-b * jnp.abs(xf - x0)) + c).astype(x.dtype)


if __name__ == "__main__":
    key = jax.random.PRNGKey(0)
    k_coef, k_x = jax.random.split(key)

    # Deterministic parameter init (synthetic, no checkpoint load).
    coefficients = init_coefficients(k_coef)

    # Small input consistent with an elementwise fit function.
    x = jax.random.normal(k_x, (2, 4, 16, 16), dtype=jnp.float32)

    y = maxwell_forward(x, coefficients)
    jax.block_until_ready(y)

    y_ref = _reference(x, coefficients)
    assert y.shape == x.shape and y.dtype == x.dtype
    assert jnp.allclose(y, y_ref, rtol=1e-5, atol=1e-6)

    print("KERNEL_OK")
</pallas_src>

<mosaic_0001>
module attributes {stable_mosaic.version = 11 : i64} {
  func.func @_maxwell_kernel(%arg0: i32, %arg1: memref<4xf32, #tpu.memory_space<smem>>, %arg2: memref<8x128xf32, #tpu.memory_space<vmem>>, %arg3: memref<8x128xf32, #tpu.memory_space<vmem>>) attributes {dimension_semantics = [#tpu.dimension_semantics<parallel>], iteration_bounds = array<i64: 2>, scalar_prefetch = 1 : i64, scratch_operands = 0 : i64, tpu.core_type = #tpu.core_type<tc>, window_params = [{transform_indices = @transform_0, window_bounds = array<i64: 8, 128>}, {transform_indices = @transform_1, window_bounds = array<i64: 8, 128>}]} {
    %c0 = arith.constant 0 : index
    %0 = memref.load %arg1[%c0] : memref<4xf32, #tpu.memory_space<smem>>
    %c1 = arith.constant 1 : index
    %1 = memref.load %arg1[%c1] : memref<4xf32, #tpu.memory_space<smem>>
    %cst = arith.constant 0.000000e+00 : f32
    %2 = arith.subf %cst, %1 : f32
    %c2 = arith.constant 2 : index
    %3 = memref.load %arg1[%c2] : memref<4xf32, #tpu.memory_space<smem>>
    %c3 = arith.constant 3 : index
    %4 = memref.load %arg1[%c3] : memref<4xf32, #tpu.memory_space<smem>>
    %c0_0 = arith.constant 0 : index
    %c0_1 = arith.constant 0 : index
    %5 = vector.load %arg2[%c0_0, %c0_1] : memref<8x128xf32, #tpu.memory_space<vmem>>, vector<8x128xf32>
    %6 = arith.mulf %5, %5 : vector<8x128xf32>
    %7 = vector.broadcast %0 : f32 to vector<8x128xf32>
    %8 = arith.mulf %7, %6 : vector<8x128xf32>
    %9 = vector.broadcast %4 : f32 to vector<8x128xf32>
    %10 = arith.subf %5, %9 : vector<8x128xf32>
    %11 = math.absf %10 : vector<8x128xf32>
    %12 = vector.broadcast %2 : f32 to vector<8x128xf32>
    %13 = arith.mulf %12, %11 : vector<8x128xf32>
    %14 = math.exp %13 : vector<8x128xf32>
    %15 = arith.mulf %8, %14 : vector<8x128xf32>
    %16 = vector.broadcast %3 : f32 to vector<8x128xf32>
    %17 = arith.addf %15, %16 : vector<8x128xf32>
    %c0_2 = arith.constant 0 : index
    %c0_3 = arith.constant 0 : index
    %18 = vector.load %arg3[%c0_2, %c0_3] : memref<8x128xf32, #tpu.memory_space<vmem>>, vector<8x128xf32>
    tpu.vector_store %arg3[%c0_2, %c0_3], %17 {strides = array<i32>} : memref<8x128xf32, #tpu.memory_space<vmem>>, vector<8x128xf32>,
    return
  }
  func.func @transform_0(%arg0: i32, %arg1: memref<4xf32, #tpu.memory_space<smem>>) -> (i32, i32) {
    %c0_i32 = arith.constant 0 : i32
    %c0_i32_0 = arith.constant 0 : i32
    return %arg0, %c0_i32 : i32, i32
  }
  func.func @transform_1(%arg0: i32, %arg1: memref<4xf32, #tpu.memory_space<smem>>) -> (i32, i32) {
    %c0_i32 = arith.constant 0 : i32
    %c0_i32_0 = arith.constant 0 : i32
    return %arg0, %c0_i32 : i32, i32
  }
}

</mosaic_0001>

<bundles_post_ra>
// kernel: tpu_custom_call.1
= control target key start
LH: loop header
LB: loop body
LE: loop exit
PB: predicated region body
PF: predicated region fallthrough
CT: control target
= control target key end

     0   :  { %s606_s0 = inlined_call_operand.hbm [shape: f32[4], index: 0, kind: input, shape index: {}]   ;;  %s607_s1 = inlined_call_operand.hbm [shape: f32[16,128], index: 1, kind: input, shape index: {}]   ;;  %s608_s2 = inlined_call_operand.hbm [shape: f32[16,128], index: 2, kind: output, shape index: {}]  }
   0x1   :  { %s305_s11 = scalar_lea.hbm %s606_s0, 16 }
   0x2   :  { %p306_p0 = scmp.ne.s32.totalorder %s606_s0, %s305_s11  ;;  %p309_p1 = scmp.lt.u32.totalorder %s305_s11, %s606_s0 }
   0x4   :  { %p311_p2 = pnand %p309_p1, %p306_p0 }
   0x6   :  { %314 = shalt.err (!%p311_p2)  }
   0x7   :  { %s415_s16 = smov [#allocation3]  }
   0x8   :  { %8 = dma.hbm_to_smem %s606_s0, 16, %s415_s16, [#allocation2] }
   0x9   :  { %389 = dma.done.wait [#allocation2], 16 }
   0xa   :  { %390 = vsyncadd [#allocation2], 4294967280 }
   0xb   :  { %10 = sfence }
   0xc   :  { %11 = vsyncpa [#allocation5], 0 }
   0xd   :  { %13 = vsyncpa [#allocation5 + $0x1], 0 }
   0xe   :  { %14 = vsyncpa [#allocation6], 0 }
   0xf   :  { %16 = vsyncpa [#allocation6 + $0x1], 0  ;;  %s445_s19 = smov 0   ;;  %s447_s20 = smov 0  }
  0x10   :  { %s449_s21 = smov 0   ;;  %s451_s22 = smov 0  }
  0x11 LB: > { %s466_s0 = sadd.s32 4294967295, %s413_s22   ;;  %s241_s23 = sadd.s32 4294967294, %s413_s22   ;;  %s413_s22 = sphi %s451_s22, %s623_s22   ;;  %s409_s21 = sphi %s449_s21, %s622_s21   ;;  %s405_s20 = sphi %s447_s20, %s621_s20   ;;  %s401_s19 = sphi %s445_s19, %s620_s19  }
  0x12   : > { %s470_s24 = sadd.s32 1, %s413_s22   ;;  %s29_s25 = sadd.s32 1, %s409_s21 }
  0x13   : > { %s26_s26 = ssub.s32 %s413_s22, %s470_s24  ;;  %p36_p3 = scmp.ne.s32.totalorder %s409_s21, %s405_s20 }
  0x14   : > { %p27_p4 = scmp.eq.s32.totalorder %s26_s26, 0  ;;  %p37_p5 = scmp.eq.s32.totalorder %s413_s22, 0 }
  0x15   : > { %p42_p6 = scmp.ne.s32.totalorder %s405_s20, %s401_s19  ;;  %p43_p7 = scmp.eq.s32.totalorder %s466_s0, 0 }
  0x16   : > { %s482_s27 = scalar_select %p27_p4, %s409_s21, %s29_s25  }
  0x17   : > { %p484_p8 = por %p37_p5, %p36_p3  ;;  %p488_p9 = por %p43_p7, %p42_p6 }
  0x18   : > { %p66_p10 = scmp.eq.s32.totalorder %s466_s0, 1  ;;  %p72_p11 = scmp.eq.s32.totalorder %s241_s23, 1 }
  0x19   : > { %p268_p13 = scmp.lt.s32.totalorder %s413_s22, 2  ;;  %s92_s4 = sand.u32 1, %s409_s21  }
  0x1a   : > { %p495_p0 = por %p66_p10, %p36_p3  ;;  %p499_p1 = por %p72_p11, %p42_p6 }
  0x1b   : > { %s245_s5 = sshll.u32 %s413_s22, 7  ;;  %s244_s6 = sshll.u32 %s92_s4, 3 }
  0x1c   : > { %s612_s30 = scalar_select %p495_p0, 1, 0 }
  0x1d   : > { %s613_s3 = scalar_select %p499_p1, 1, 0 }
  0x1e   : > { %s508_s9 = scalar_lea.hbm %s607_s1, %s245_s5  ;;  %s96_s10 = scalar_lea.vmem [#allocation4], %s244_s6 }
  0x1f   : > { %s103_s11 = sshll.u32 %s96_s10, 4  ;;  %p512_p2 = pnand %p268_p13, %p484_p8  ;;  %s516_s11 = int_to_ptr.vmem [resolvable:$true] %s103_s11 }
  0x20   : > { %s93_s13 = scalar_lea.sflag [#allocation5], %s92_s4  ;;  %s315_s14 = scalar_lea.hbm %s508_s9, 128 }
  0x21   : > { %p316_p5 = scmp.ne.s32.totalorder %s508_s9, %s315_s14  ;;  %p317_p6 = pneg %p512_p2 }
  0x22   : > { %s320_s17 = scalar_lea.hbm %s607_s1, 256  ;;  %p321_p8 = scmp.lt.u32.totalorder %s508_s9, %s607_s1 }
  0x23   : > { %p318_p7 = pnand %p317_p6, %p316_p5  ;;  %p322_p11 = scmp.lt.u32.totalorder %s320_s17, %s315_s14 }
  0x24   : > { %p324_p12 = scmp.lt.u32.totalorder %s315_s14, %s508_s9 }
  0x25   : > { %p319_p10 = pneg %p318_p7  ;;  %p323_p13 = por %p322_p11, %p321_p8 }
  0x27   : > { %p325_p3 = por %p324_p12, %p323_p13 }
  0x29   : > { %p326_p4 = pnand %p325_p3, %p319_p10 }
  0x2b   : > { %329 = shalt.err (!%p326_p4)
}
  0x2c   : > { %s330_s25 = scalar_lea.vmem %s516_s11, 128  ;;  %s416_s26 = smov [#allocation4]  }
  0x2d   : > { %p331_p5 = scmp.ne.s32.totalorder %s516_s11, %s330_s25  ;;  %s335_s28 = sshll.u32 %s416_s26, 4  ;;  %s336_s28 = int_to_ptr.vmem [resolvable:$false] %s335_s28 }
  0x2e   : > { %s337_s4 = scalar_lea.vmem %s336_s28, 256  ;;  %p338_p0 = scmp.lt.s32.totalorder %s516_s11, %s336_s28 }
  0x2f   : > { %p333_p7 = pnand %p331_p5, %p317_p6  ;;  %p339_p8 = scmp.lt.s32.totalorder %s337_s4, %s330_s25 }
  0x31   : > { %p334_p1 = pneg %p333_p7  ;;  %p340_p11 = por %p339_p8, %p338_p0 }
  0x33   : > { %p341_p12 = pnand %p340_p11, %p334_p1 }
  0x35   : > { %344 = shalt.err (!%p341_p12)
}
  0x36   : > { %263 = dma.hbm_to_vmem [thread:$0]  (!%p512_p2), %s508_s9, 128, %s516_s11, %s93_s13  }
  0x37   : > { %p615_p3 = scmp.lt.s32.totalorder %s413_s22, 3  ;;  %p616_p4 = scmp.ge.s32.totalorder %s413_s22, 1 }
  0x39   : > { %p109_p6 = pnand %p616_p4, %p615_p3 }
  0x3a   : > { %s550_s5 = sand.u32 (!%p109_p6), 1, %s405_s20  }
  0x3b   : > { %112 = sbr.rel (%p109_p6) target bundleno = 111 (0x6f), region = 24  ;;  %s247_s6 = sshll.u32 (!%p109_p6), %s550_s5, 3 }
  0x3c   : > { %s115_s7 = scalar_lea.sflag (!%p109_p6), [#allocation5], %s550_s5  ;;  %s118_s8 = scalar_lea.vmem (!%p109_p6), [#allocation4], %s247_s6 }
  0x42   : > { %392 = dma.done.wait (%p488_p9), %s115_s7, 128  }
  0x43   : > { %394 = vsyncadd (%p488_p9), %s115_s7, 4294967168  ;;  %s249_s10 = sld [smem:[#allocation3 + $0x1]]  ;;  %s251_s9 = sld [smem:[#allocation3 + $0x3]]  ;;  %v142_v0 = vld [vmem:[%s118_s8] sm:$0xff] }
  0x44   : > { %s137_s12 = sld [smem:[#allocation3]]  ;;  %s250_s13 = sld [smem:[#allocation3 + $0x2]]  ;;  %v143_v7 = vmul.f32 %v142_v0, %v142_v0 }
  0x45   : > { %s136_s29 = scalar_lea.vmem [#allocation7], %s247_s6  ;;  %s253_s15 = sshll.u32 %s466_s0, 7 }
  0x46   : > { %s171_s14 = sshll.u32 %s136_s29, 4  ;;  %s564_s18 = scalar_lea.hbm %s608_s2, %s253_s15  ;;  %s559_s14 = int_to_ptr.vmem [resolvable:$true] %s171_s14 }
  0x47   : > { %s158_s23 = scalar_lea.sflag [#allocation6], %s550_s5  ;;  %s345_s25 = scalar_lea.vmem %s559_s14, 128 }
  0x48   : > { %p346_p9 = scmp.ne.s32.totalorder %s559_s14, %s345_s25  ;;  %p617_p0 = scmp.ne.s32.totalorder %s612_s30, 0 }
  0x49   : > { %s139_s11 = ssub.f32 0.0, %s249_s10  ;;  %v146_v1 = vstv %s251_s9  ;;  %s417_s0 = smov [#allocation7]  }
  0x4a   : > { %v147_v2 = vsub.f32 %v142_v0, %v146_v1  ;;  %v144_v8 = vstv %s137_s12  ;;  %v154_v11 = vstv %s250_s13  ;;  %p347_p1 = pnand %p346_p9, %p617_p0  ;;  %s349_s26 = sshll.u32 %s417_s0, 4  ;;  %s350_s26 = int_to_ptr.vmem [resolvable:$false] %s349_s26 }
  0x4b   : > { %v149_v3 = vstv %s139_s11  ;;  %v145_v9 = vmul.f32 %v144_v8, %v143_v7  ;;  %s351_s28 = scalar_lea.vmem %s350_s26, 256  ;;  %p352_p10 = scmp.lt.s32.totalorder %s559_s14, %s350_s26 }
  0x4c   : > { %v148_v4 = vand.u32 2147483647, %v147_v2  ;;  %p348_p2 = pneg %p347_p1  ;;  %p353_p13 = scmp.lt.s32.totalorder %s351_s28, %s345_s25 }
  0x4e   : > { %v150_v5 = vmul.f32 %v149_v3, %v148_v4  ;;  %p354_p5 = por %p353_p13, %p352_p10 }
  0x50   : > { %v151_v6 = vmul.f32 1.442695, %v150_v5  ;;  %p355_p7 = pnand %p354_p5, %p348_p2 }
  0x52   : > { %303 = vpow2.f32 %v151_v6 }
  0x5c   : > { %v304_v10 = vpop.eup %303 }
  0x5d   : > { %v153_v12 = vmul.f32 %v304_v10, %v145_v9 }
  0x5f   : > { %v155_v13 = vadd.f32 %v154_v11, %v153_v12 }
  0x61   : > { %156 = vst [vmem:[%s136_s29] sm:$0xff] %v155_v13 }
  0x62   : > { %358 = shalt.err (!%p355_p7)
}
  0x63   : > { %s359_s4 = scalar_lea.hbm %s564_s18, 128  ;;  %s363_s7 = scalar_lea.hbm %s608_s2, 256 }
  0x64   : > { %p360_p8 = scmp.ne.s32.totalorder %s564_s18, %s359_s4  ;;  %p364_p3 = scmp.lt.u32.totalorder %s564_s18, %s608_s2 }
  0x65   : > { %p365_p4 = scmp.lt.u32.totalorder %s363_s7, %s359_s4  ;;  %p367_p9 = scmp.lt.u32.totalorder %s359_s4, %s564_s18 }
  0x66   : > { %p361_p11 = pnand %p360_p8, %p617_p0 }
  0x67   : > { %p366_p6 = por %p365_p4, %p364_p3 }
  0x68   : > { %p362_p12 = pneg %p361_p11 }
  0x69   : > { %p368_p1 = por %p367_p9, %p366_p6 }
  0x6b   : > { %p369_p2 = pnand %p368_p1, %p362_p12 }
  0x6d   : > { %372 = shalt.err (!%p369_p2)
}
  0x6e   : > { %258 = dma.vmem_to_hbm [thread:$0]  (%p617_p0), %s559_s14, 128, %s564_s18, %s158_s23  }
  0x6f PF: > { %s183_s9 = sand.u32 1, %s401_s19   ;;  %p618_p10 = scmp.ne.s32.totalorder %s613_s3, 0 }
  0x70   : > { %p619_p13 = scmp.ge.s32.totalorder %s413_s22, 2  ;;  %s184_s11 = scalar_lea.sflag [#allocation6], %s183_s9 }
  0x72   : > { %p265_p5 = pnand %p619_p13, %p618_p10 }
  0x74   : > { %396 = dma.done.wait (!%p265_p5), %s184_s11, 128  }
  0x75   : > { %398 = vsyncadd (!%p265_p5), %s184_s11, 4294967168  ;;  %p19_p7 = scmp.ge.s32.totalorder %s470_s24, 4   ;;  %s620_s19 = smov %s405_s20 }
  0x76   : > { %s621_s20 = smov %s409_s21  ;;  %s622_s21 = smov %s482_s27 }
  0x77   : > { %s623_s22 = smov %s470_s24  ;;  %21 = sbr.rel (!%p19_p7) target bundleno = 17 (0x11), region = 69 }
  0x7e   :  { %189 = vsyncpa [#allocation5], 1 }
  0x7f   :  { %191 = vsyncpa [#allocation5 + $0x1], 1 }
  0x80   :  { %192 = vsyncpa [#allocation6], 1 }
  0x81   :  { %194 = vsyncpa [#allocation6 + $0x1], 1 }

</bundles_post_ra>
